<compile_context>
chip_gen: v7x
topology: tpu7x:2x2x1
jax: 0.10.0
libtpu: 0.0.40
codegen_flags: <defaults>
</compile_context>

<pallas_src>
import functools

import jax
import jax.numpy as jnp
from jax.experimental import pallas as pl
from jax.experimental.pallas import tpu as pltpu


def _round_up(v: int, m: int) -> int:
    return ((v + m - 1) // m) * m


def _patch_embed_kernel(x_ref, w_ref, b_ref, o_ref, xrow_ref, *, C, p, gh):
    """Processes one (b, d) slab.

    x_ref:    (C, gh, p, gw, p)  raw pixels (input dtype)
    w_ref:    (K, E)             compute dtype (bf16), K = C*p*p in (c,ph,pw) order
    b_ref:    (1, E)             float32
    o_ref:    (gh, gw, E)        output dtype
    xrow_ref: (gw, K)            scratch: one row of patches, gathered in VMEM
    """

    def per_row(gi, carry):
        # Gather one row of patches into (gw, K) layout using only static lane
        # slices and a dynamic leading-dim index (no transposes / reshapes).
        for c in range(C):
            for ph in range(p):
                col = (c * p + ph) * p
                xrow_ref[:, col:col + p] = x_ref[c, gi, ph].astype(xrow_ref.dtype)
        # One MXU matmul per patch-row: (gw, K) @ (K, E), f32 accumulation.
        acc = jnp.dot(xrow_ref[...].astype(w_ref.dtype), w_ref[...],
                      preferred_element_type=jnp.float32)
        o_ref[gi] = (acc + b_ref[...]).astype(o_ref.dtype)
        return carry

    jax.lax.fori_loop(0, gh, per_row, 0)


def patch_embedding_3d(x, weight, bias, patch_size, *,
                       compute_dtype=jnp.bfloat16, out_dtype=None):
    """x: (B, C, D, H, W); weight: (E, C, 1, p, p); bias: (E,) -> (B, D*gh*gw, E)."""
    B, C, D, H, W = x.shape
    p = patch_size
    gh, gw = H // p, W // p
    E = weight.shape[0]
    K = C * p * p
    if out_dtype is None:
        out_dtype = x.dtype

    # Match Conv3d's flooring behaviour for non-divisible sizes (no-op slice otherwise).
    x = x[:, :, :, :gh * p, :gw * p]

    # Free (dim-splitting only) reshape: no HBM copy, no transpose.
    x7 = x.reshape(B, C, D, gh, p, gw, p)

    # Conv3d weight (E, C, 1, p, p) -> (K, E) with K in (c, ph, pw) order (tiny, done once).
    wm = jnp.transpose(weight.reshape(E, K)).astype(compute_dtype)
    bm = bias.astype(jnp.float32).reshape(1, E)

    # --- per-step VMEM footprint estimate (tiled-layout padding included) ---
    x_it = jnp.dtype(x.dtype).itemsize
    c_it = jnp.dtype(compute_dtype).itemsize
    o_it = jnp.dtype(out_dtype).itemsize
    sub = lambda n: _round_up(max(n, 1), 16)     # sublane padding (worst case)
    lane = lambda n: _round_up(max(n, 1), 128)   # lane padding
    vmem_bytes = (
        2 * C * gh * p * sub(gw) * lane(p) * x_it   # x slab, double-buffered
        + sub(K) * lane(E) * c_it                   # weight, single-buffered
        + sub(1) * lane(E) * 4                      # bias, single-buffered
        + 2 * gh * sub(gw) * lane(E) * o_it         # output block, double-buffered
        + sub(gw) * lane(K) * x_it                  # xrow scratch
    )
    vmem_limit = int(max(32 << 20, vmem_bytes + (8 << 20)))

    cost = pl.CostEstimate(
        flops=2 * B * D * gh * gw * K * E,
        transcendentals=0,
        bytes_accessed=(B * C * D * gh * p * gw * p * x_it
                        + K * E * c_it + E * 4
                        + B * D * gh * gw * E * o_it),
    )

    kernel = functools.partial(_patch_embed_kernel, C=C, p=p, gh=gh)

    out = pl.pallas_call(
        kernel,
        out_shape=jax.ShapeDtypeStruct((B, D, gh, gw, E), out_dtype),
        grid_spec=pltpu.PrefetchScalarGridSpec(
            num_scalar_prefetch=0,
            grid=(B, D),
            in_specs=[
                # One (b, d) slab of raw pixels. The last two block dims equal
                # the full (gw, p) axes, so no (8, 128) divisibility issues.
                pl.BlockSpec(
                    (pl.Squeezed(), C, pl.Squeezed(), gh, p, gw, p),
                    lambda b, d: (b, 0, d, 0, 0, 0, 0)),
                # Constant-index blocks: single-buffered to save VMEM.
                pl.BlockSpec((K, E), lambda b, d: (0, 0),
                             pipeline_mode=pl.Buffered(1)),
                pl.BlockSpec((1, E), lambda b, d: (0, 0),
                             pipeline_mode=pl.Buffered(1)),
            ],
            out_specs=pl.BlockSpec(
                (pl.Squeezed(), pl.Squeezed(), gh, gw, E),
                lambda b, d: (b, d, 0, 0, 0)),
            scratch_shapes=[pltpu.VMEM((gw, K), x.dtype)],
        ),
        compiler_params=pltpu.CompilerParams(
            dimension_semantics=("parallel", "parallel"),
            vmem_limit_bytes=vmem_limit,
        ),
        cost_estimate=cost,
    )(x7, wm, bm)

    # Merge (D, gh, gw) into the token axis (free reshape); token order matches
    # Conv3d -> flatten(2) -> transpose(1, 2).
    return out.reshape(B, D * gh * gw, E)


def _reference(x, weight, bias, patch_size):
    """Pure-JAX f32 reference (equivalent to Conv3d + flatten + transpose)."""
    B, C, D, H, W = x.shape
    p = patch_size
    gh, gw = H // p, W // p
    E = weight.shape[0]
    xp = x.reshape(B, C, D, gh, p, gw, p)
    xp = jnp.transpose(xp, (0, 2, 3, 5, 1, 4, 6)).reshape(B * D * gh * gw, C * p * p)
    wm = jnp.transpose(weight.reshape(E, C * p * p))
    out = xp @ wm + bias[None, :]
    return out.reshape(B, D * gh * gw, E)


if __name__ == "__main__":
    # Small shapes consistent with the module.
    img_size = 16
    patch_size = 4
    in_channels = 4
    embed_dim = 32
    batch = 2
    depth = 2  # conv kernel/stride along D is 1 -> D preserved

    key = jax.random.PRNGKey(0)
    kx, kw, kb = jax.random.split(key, 3)

    x = jax.random.normal(
        kx, (batch, in_channels, depth, img_size, img_size), dtype=jnp.float32)
    weight = jax.random.normal(
        kw, (embed_dim, in_channels, 1, patch_size, patch_size),
        dtype=jnp.float32) * 0.02
    bias = jax.random.normal(kb, (embed_dim,), dtype=jnp.float32) * 0.02

    fn = jax.jit(functools.partial(patch_embedding_3d, patch_size=patch_size))
    out = jax.block_until_ready(fn(x, weight, bias))

    # Shape / dtype sanity: (B, D * grid^2, E), same dtype as input.
    grid = img_size // patch_size
    assert out.shape == (batch, depth * grid * grid, embed_dim), out.shape
    assert out.dtype == x.dtype, out.dtype

    # Numerical sanity vs f32 reference (bf16 MXU inputs, f32 accumulation):
    # use a relative tolerance so it scales with K / activation magnitude.
    ref = _reference(x, weight, bias, patch_size)
    abs_err = float(jnp.max(jnp.abs(out.astype(jnp.float32) - ref)))
    scale = float(jnp.max(jnp.abs(ref)))
    assert abs_err <= 2e-2 * max(1.0, scale), (abs_err, scale)

    print("KERNEL_OK")
</pallas_src>

<mosaic_0001>
module attributes {stable_mosaic.version = 11 : i64} {
  func.func @_patch_embed_kernel(%arg0: i32, %arg1: i32, %arg2: memref<1x4x1x4x4x4x4xf32, #tpu.memory_space<vmem>>, %arg3: memref<64x32xbf16, #tpu.memory_space<vmem>>, %arg4: memref<1x32xf32, #tpu.memory_space<vmem>>, %arg5: memref<1x1x4x4x32xf32, #tpu.memory_space<vmem>>, %arg6: memref<4x64xf32, #tpu.memory_space<vmem>>) attributes {dimension_semantics = [#tpu.dimension_semantics<parallel>, #tpu.dimension_semantics<parallel>], iteration_bounds = array<i64: 2, 2>, scalar_prefetch = 0 : i64, scratch_operands = 1 : i64, tpu.core_type = #tpu.core_type<tc>, window_params = [{transform_indices = @transform_0, window_bounds = array<i64: 1, 4, 1, 4, 4, 4, 4>}, {pipeline_mode = #tpu.pipeline_mode<synchronous>, transform_indices = @transform_1, window_bounds = array<i64: 64, 32>}, {pipeline_mode = #tpu.pipeline_mode<synchronous>, transform_indices = @transform_2, window_bounds = array<i64: 1, 32>}, {transform_indices = @transform_3, window_bounds = array<i64: 1, 1, 4, 4, 32>}]} {
    %c0_i32 = arith.constant 0 : i32
    %c4_i32 = arith.constant 4 : i32
    %0 = arith.addi %c0_i32, %c4_i32 : i32
    %c1_i32 = arith.constant 1 : i32
    scf.for %arg7 = %c0_i32 to %0 step %c1_i32  : i32 {
      %c0 = arith.constant 0 : index
      %c0_1 = arith.constant 0 : index
      %c0_2 = arith.constant 0 : index
      %1 = arith.index_cast %arg7 : i32 to index
      %c0_3 = arith.constant 0 : index
      %c0_4 = arith.constant 0 : index
      %c0_5 = arith.constant 0 : index
      %2 = vector.load %arg2[%c0, %c0_1, %c0_2, %1, %c0_3, %c0_4, %c0_5] : memref<1x4x1x4x4x4x4xf32, #tpu.memory_space<vmem>>, vector<1x1x1x1x1x4x4xf32>
      %3 = vector.shape_cast %2 : vector<1x1x1x1x1x4x4xf32> to vector<4x4xf32>
      %c0_6 = arith.constant 0 : index
      %c0_7 = arith.constant 0 : index
      %4 = vector.load %arg6[%c0_6, %c0_7] : memref<4x64xf32, #tpu.memory_space<vmem>>, vector<4x4xf32>
      tpu.vector_store %arg6[%c0_6, %c0_7], %3 {strides = array<i32>} : memref<4x64xf32, #tpu.memory_space<vmem>>, vector<4x4xf32>,
      %c0_8 = arith.constant 0 : index
      %c0_9 = arith.constant 0 : index
      %c0_10 = arith.constant 0 : index
      %5 = arith.index_cast %arg7 : i32 to index
      %c1 = arith.constant 1 : index
      %c0_11 = arith.constant 0 : index
      %c0_12 = arith.constant 0 : index
      %6 = vector.load %arg2[%c0_8, %c0_9, %c0_10, %5, %c1, %c0_11, %c0_12] : memref<1x4x1x4x4x4x4xf32, #tpu.memory_space<vmem>>, vector<1x1x1x1x1x4x4xf32>
      %7 = vector.shape_cast %6 : vector<1x1x1x1x1x4x4xf32> to vector<4x4xf32>
      %c0_13 = arith.constant 0 : index
      %c4 = arith.constant 4 : index
      %8 = vector.load %arg6[%c0_13, %c4] : memref<4x64xf32, #tpu.memory_space<vmem>>, vector<4x4xf32>
      tpu.vector_store %arg6[%c0_13, %c4], %7 {strides = array<i32>} : memref<4x64xf32, #tpu.memory_space<vmem>>, vector<4x4xf32>,
      %c0_14 = arith.constant 0 : index
      %c0_15 = arith.constant 0 : index
      %c0_16 = arith.constant 0 : index
      %9 = arith.index_cast %arg7 : i32 to index
      %c2 = arith.constant 2 : index
      %c0_17 = arith.constant 0 : index
      %c0_18 = arith.constant 0 : index
      %10 = vector.load %arg2[%c0_14, %c0_15, %c0_16, %9, %c2, %c0_17, %c0_18] : memref<1x4x1x4x4x4x4xf32, #tpu.memory_space<vmem>>, vector<1x1x1x1x1x4x4xf32>
      %11 = vector.shape_cast %10 : vector<1x1x1x1x1x4x4xf32> to vector<4x4xf32>
      %c0_19 = arith.constant 0 : index
      %c8 = arith.constant 8 : index
      %12 = vector.load %arg6[%c0_19, %c8] : memref<4x64xf32, #tpu.memory_space<vmem>>, vector<4x4xf32>
      tpu.vector_store %arg6[%c0_19, %c8], %11 {strides = array<i32>} : memref<4x64xf32, #tpu.memory_space<vmem>>, vector<4x4xf32>,
      %c0_20 = arith.constant 0 : index
      %c0_21 = arith.constant 0 : index
      %c0_22 = arith.constant 0 : index
      %13 = arith.index_cast %arg7 : i32 to index
      %c3 = arith.constant 3 : index
      %c0_23 = arith.constant 0 : index
      %c0_24 = arith.constant 0 : index
      %14 = vector.load %arg2[%c0_20, %c0_21, %c0_22, %13, %c3, %c0_23, %c0_24] : memref<1x4x1x4x4x4x4xf32, #tpu.memory_space<vmem>>, vector<1x1x1x1x1x4x4xf32>
      %15 = vector.shape_cast %14 : vector<1x1x1x1x1x4x4xf32> to vector<4x4xf32>
      %c0_25 = arith.constant 0 : index
      %c12 = arith.constant 12 : index
      %16 = vector.load %arg6[%c0_25, %c12] : memref<4x64xf32, #tpu.memory_space<vmem>>, vector<4x4xf32>
      tpu.vector_store %arg6[%c0_25, %c12], %15 {strides = array<i32>} : memref<4x64xf32, #tpu.memory_space<vmem>>, vector<4x4xf32>,
      %c0_26 = arith.constant 0 : index
      %c1_27 = arith.constant 1 : index
      %c0_28 = arith.constant 0 : index
      %17 = arith.index_cast %arg7 : i32 to index
      %c0_29 = arith.constant 0 : index
      %c0_30 = arith.constant 0 : index
      %c0_31 = arith.constant 0 : index
      %18 = vector.load %arg2[%c0_26, %c1_27, %c0_28, %17, %c0_29, %c0_30, %c0_31] : memref<1x4x1x4x4x4x4xf32, #tpu.memory_space<vmem>>, vector<1x1x1x1x1x4x4xf32>
      %19 = vector.shape_cast %18 : vector<1x1x1x1x1x4x4xf32> to vector<4x4xf32>
      %c0_32 = arith.constant 0 : index
      %c16 = arith.constant 16 : index
      %20 = vector.load %arg6[%c0_32, %c16] : memref<4x64xf32, #tpu.memory_space<vmem>>, vector<4x4xf32>
      tpu.vector_store %arg6[%c0_32, %c16], %19 {strides = array<i32>} : memref<4x64xf32, #tpu.memory_space<vmem>>, vector<4x4xf32>,
      %c0_33 = arith.constant 0 : index
      %c1_34 = arith.constant 1 : index
      %c0_35 = arith.constant 0 : index
      %21 = arith.index_cast %arg7 : i32 to index
      %c1_36 = arith.constant 1 : index
      %c0_37 = arith.constant 0 : index
      %c0_38 = arith.constant 0 : index
      %22 = vector.load %arg2[%c0_33, %c1_34, %c0_35, %21, %c1_36, %c0_37, %c0_38] : memref<1x4x1x4x4x4x4xf32, #tpu.memory_space<vmem>>, vector<1x1x1x1x1x4x4xf32>
      %23 = vector.shape_cast %22 : vector<1x1x1x1x1x4x4xf32> to vector<4x4xf32>
      %c0_39 = arith.constant 0 : index
      %c20 = arith.constant 20 : index
      %24 = vector.load %arg6[%c0_39, %c20] : memref<4x64xf32, #tpu.memory_space<vmem>>, vector<4x4xf32>
      tpu.vector_store %arg6[%c0_39, %c20], %23 {strides = array<i32>} : memref<4x64xf32, #tpu.memory_space<vmem>>, vector<4x4xf32>,
      %c0_40 = arith.constant 0 : index
      %c1_41 = arith.constant 1 : index
      %c0_42 = arith.constant 0 : index
      %25 = arith.index_cast %arg7 : i32 to index
      %c2_43 = arith.constant 2 : index
      %c0_44 = arith.constant 0 : index
      %c0_45 = arith.constant 0 : index
      %26 = vector.load %arg2[%c0_40, %c1_41, %c0_42, %25, %c2_43, %c0_44, %c0_45] : memref<1x4x1x4x4x4x4xf32, #tpu.memory_space<vmem>>, vector<1x1x1x1x1x4x4xf32>
      %27 = vector.shape_cast %26 : vector<1x1x1x1x1x4x4xf32> to vector<4x4xf32>
      %c0_46 = arith.constant 0 : index
      %c24 = arith.constant 24 : index
      %28 = vector.load %arg6[%c0_46, %c24] : memref<4x64xf32, #tpu.memory_space<vmem>>, vector<4x4xf32>
      tpu.vector_store %arg6[%c0_46, %c24], %27 {strides = array<i32>} : memref<4x64xf32, #tpu.memory_space<vmem>>, vector<4x4xf32>,
      %c0_47 = arith.constant 0 : index
      %c1_48 = arith.constant 1 : index
      %c0_49 = arith.constant 0 : index
      %29 = arith.index_cast %arg7 : i32 to index
      %c3_50 = arith.constant 3 : index
      %c0_51 = arith.constant 0 : index
      %c0_52 = arith.constant 0 : index
      %30 = vector.load %arg2[%c0_47, %c1_48, %c0_49, %29, %c3_50, %c0_51, %c0_52] : memref<1x4x1x4x4x4x4xf32, #tpu.memory_space<vmem>>, vector<1x1x1x1x1x4x4xf32>
      %31 = vector.shape_cast %30 : vector<1x1x1x1x1x4x4xf32> to vector<4x4xf32>
      %c0_53 = arith.constant 0 : index
      %c28 = arith.constant 28 : index
      %32 = vector.load %arg6[%c0_53, %c28] : memref<4x64xf32, #tpu.memory_space<vmem>>, vector<4x4xf32>
      tpu.vector_store %arg6[%c0_53, %c28], %31 {strides = array<i32>} : memref<4x64xf32, #tpu.memory_space<vmem>>, vector<4x4xf32>,
      %c0_54 = arith.constant 0 : index
      %c2_55 = arith.constant 2 : index
      %c0_56 = arith.constant 0 : index
      %33 = arith.index_cast %arg7 : i32 to index
      %c0_57 = arith.constant 0 : index
      %c0_58 = arith.constant 0 : index
      %c0_59 = arith.constant 0 : index
      %34 = vector.load %arg2[%c0_54, %c2_55, %c0_56, %33, %c0_57, %c0_58, %c0_59] : memref<1x4x1x4x4x4x4xf32, #tpu.memory_space<vmem>>, vector<1x1x1x1x1x4x4xf32>
      %35 = vector.shape_cast %34 : vector<1x1x1x1x1x4x4xf32> to vector<4x4xf32>
      %c0_60 = arith.constant 0 : index
      %c32 = arith.constant 32 : index
      %36 = vector.load %arg6[%c0_60, %c32] : memref<4x64xf32, #tpu.memory_space<vmem>>, vector<4x4xf32>
      tpu.vector_store %arg6[%c0_60, %c32], %35 {strides = array<i32>} : memref<4x64xf32, #tpu.memory_space<vmem>>, vector<4x4xf32>,
      %c0_61 = arith.constant 0 : index
      %c2_62 = arith.constant 2 : index
      %c0_63 = arith.constant 0 : index
      %37 = arith.index_cast %arg7 : i32 to index
      %c1_64 = arith.constant 1 : index
      %c0_65 = arith.constant 0 : index
      %c0_66 = arith.constant 0 : index
      %38 = vector.load %arg2[%c0_61, %c2_62, %c0_63, %37, %c1_64, %c0_65, %c0_66] : memref<1x4x1x4x4x4x4xf32, #tpu.memory_space<vmem>>, vector<1x1x1x1x1x4x4xf32>
      %39 = vector.shape_cast %38 : vector<1x1x1x1x1x4x4xf32> to vector<4x4xf32>
      %c0_67 = arith.constant 0 : index
      %c36 = arith.constant 36 : index
      %40 = vector.load %arg6[%c0_67, %c36] : memref<4x64xf32, #tpu.memory_space<vmem>>, vector<4x4xf32>
      tpu.vector_store %arg6[%c0_67, %c36], %39 {strides = array<i32>} : memref<4x64xf32, #tpu.memory_space<vmem>>, vector<4x4xf32>,
      %c0_68 = arith.constant 0 : index
      %c2_69 = arith.constant 2 : index
      %c0_70 = arith.constant 0 : index
      %41 = arith.index_cast %arg7 : i32 to index
      %c2_71 = arith.constant 2 : index
      %c0_72 = arith.constant 0 : index
      %c0_73 = arith.constant 0 : index
      %42 = vector.load %arg2[%c0_68, %c2_69, %c0_70, %41, %c2_71, %c0_72, %c0_73] : memref<1x4x1x4x4x4x4xf32, #tpu.memory_space<vmem>>, vector<1x1x1x1x1x4x4xf32>
      %43 = vector.shape_cast %42 : vector<1x1x1x1x1x4x4xf32> to vector<4x4xf32>
      %c0_74 = arith.constant 0 : index
      %c40 = arith.constant 40 : index
      %44 = vector.load %arg6[%c0_74, %c40] : memref<4x64xf32, #tpu.memory_space<vmem>>, vector<4x4xf32>
      tpu.vector_store %arg6[%c0_74, %c40], %43 {strides = array<i32>} : memref<4x64xf32, #tpu.memory_space<vmem>>, vector<4x4xf32>,
      %c0_75 = arith.constant 0 : index
      %c2_76 = arith.constant 2 : index
      %c0_77 = arith.constant 0 : index
      %45 = arith.index_cast %arg7 : i32 to index
      %c3_78 = arith.constant 3 : index
      %c0_79 = arith.constant 0 : index
      %c0_80 = arith.constant 0 : index
      %46 = vector.load %arg2[%c0_75, %c2_76, %c0_77, %45, %c3_78, %c0_79, %c0_80] : memref<1x4x1x4x4x4x4xf32, #tpu.memory_space<vmem>>, vector<1x1x1x1x1x4x4xf32>
      %47 = vector.shape_cast %46 : vector<1x1x1x1x1x4x4xf32> to vector<4x4xf32>
      %c0_81 = arith.constant 0 : index
      %c44 = arith.constant 44 : index
      %48 = vector.load %arg6[%c0_81, %c44] : memref<4x64xf32, #tpu.memory_space<vmem>>, vector<4x4xf32>
      tpu.vector_store %arg6[%c0_81, %c44], %47 {strides = array<i32>} : memref<4x64xf32, #tpu.memory_space<vmem>>, vector<4x4xf32>,
      %c0_82 = arith.constant 0 : index
      %c3_83 = arith.constant 3 : index
      %c0_84 = arith.constant 0 : index
      %49 = arith.index_cast %arg7 : i32 to index
      %c0_85 = arith.constant 0 : index
      %c0_86 = arith.constant 0 : index
      %c0_87 = arith.constant 0 : index
      %50 = vector.load %arg2[%c0_82, %c3_83, %c0_84, %49, %c0_85, %c0_86, %c0_87] : memref<1x4x1x4x4x4x4xf32, #tpu.memory_space<vmem>>, vector<1x1x1x1x1x4x4xf32>
      %51 = vector.shape_cast %50 : vector<1x1x1x1x1x4x4xf32> to vector<4x4xf32>
      %c0_88 = arith.constant 0 : index
      %c48 = arith.constant 48 : index
      %52 = vector.load %arg6[%c0_88, %c48] : memref<4x64xf32, #tpu.memory_space<vmem>>, vector<4x4xf32>
      tpu.vector_store %arg6[%c0_88, %c48], %51 {strides = array<i32>} : memref<4x64xf32, #tpu.memory_space<vmem>>, vector<4x4xf32>,
      %c0_89 = arith.constant 0 : index
      %c3_90 = arith.constant 3 : index
      %c0_91 = arith.constant 0 : index
      %53 = arith.index_cast %arg7 : i32 to index
      %c1_92 = arith.constant 1 : index
      %c0_93 = arith.constant 0 : index
      %c0_94 = arith.constant 0 : index
      %54 = vector.load %arg2[%c0_89, %c3_90, %c0_91, %53, %c1_92, %c0_93, %c0_94] : memref<1x4x1x4x4x4x4xf32, #tpu.memory_space<vmem>>, vector<1x1x1x1x1x4x4xf32>
      %55 = vector.shape_cast %54 : vector<1x1x1x1x1x4x4xf32> to vector<4x4xf32>
      %c0_95 = arith.constant 0 : index
      %c52 = arith.constant 52 : index
      %56 = vector.load %arg6[%c0_95, %c52] : memref<4x64xf32, #tpu.memory_space<vmem>>, vector<4x4xf32>
      tpu.vector_store %arg6[%c0_95, %c52], %55 {strides = array<i32>} : memref<4x64xf32, #tpu.memory_space<vmem>>, vector<4x4xf32>,
      %c0_96 = arith.constant 0 : index
      %c3_97 = arith.constant 3 : index
      %c0_98 = arith.constant 0 : index
      %57 = arith.index_cast %arg7 : i32 to index
      %c2_99 = arith.constant 2 : index
      %c0_100 = arith.constant 0 : index
      %c0_101 = arith.constant 0 : index
      %58 = vector.load %arg2[%c0_96, %c3_97, %c0_98, %57, %c2_99, %c0_100, %c0_101] : memref<1x4x1x4x4x4x4xf32, #tpu.memory_space<vmem>>, vector<1x1x1x1x1x4x4xf32>
      %59 = vector.shape_cast %58 : vector<1x1x1x1x1x4x4xf32> to vector<4x4xf32>
      %c0_102 = arith.constant 0 : index
      %c56 = arith.constant 56 : index
      %60 = vector.load %arg6[%c0_102, %c56] : memref<4x64xf32, #tpu.memory_space<vmem>>, vector<4x4xf32>
      tpu.vector_store %arg6[%c0_102, %c56], %59 {strides = array<i32>} : memref<4x64xf32, #tpu.memory_space<vmem>>, vector<4x4xf32>,
      %c0_103 = arith.constant 0 : index
      %c3_104 = arith.constant 3 : index
      %c0_105 = arith.constant 0 : index
      %61 = arith.index_cast %arg7 : i32 to index
      %c3_106 = arith.constant 3 : index
      %c0_107 = arith.constant 0 : index
      %c0_108 = arith.constant 0 : index
      %62 = vector.load %arg2[%c0_103, %c3_104, %c0_105, %61, %c3_106, %c0_107, %c0_108] : memref<1x4x1x4x4x4x4xf32, #tpu.memory_space<vmem>>, vector<1x1x1x1x1x4x4xf32>
      %63 = vector.shape_cast %62 : vector<1x1x1x1x1x4x4xf32> to vector<4x4xf32>
      %c0_109 = arith.constant 0 : index
      %c60 = arith.constant 60 : index
      %64 = vector.load %arg6[%c0_109, %c60] : memref<4x64xf32, #tpu.memory_space<vmem>>, vector<4x4xf32>
      tpu.vector_store %arg6[%c0_109, %c60], %63 {strides = array<i32>} : memref<4x64xf32, #tpu.memory_space<vmem>>, vector<4x4xf32>,
      %c0_110 = arith.constant 0 : index
      %c0_111 = arith.constant 0 : index
      %65 = vector.load %arg6[%c0_110, %c0_111] : memref<4x64xf32, #tpu.memory_space<vmem>>, vector<4x64xf32>
      %66 = arith.truncf %65 : vector<4x64xf32> to vector<4x64xbf16>
      %c0_112 = arith.constant 0 : index
      %c0_113 = arith.constant 0 : index
      %67 = vector.load %arg3[%c0_112, %c0_113] : memref<64x32xbf16, #tpu.memory_space<vmem>>, vector<64x32xbf16>
      %cst = arith.constant dense<0.000000e+00> : vector<4x32xf32>
      %68 = tpu.matmul %66, %67, %cst {dimension_numbers = #tpu.dot_dimension_numbers<[1], [0], [0], [1], [0, 0, 1, 1], [], []>} : vector<4x64xbf16>, vector<64x32xbf16>, vector<4x32xf32> -> vector<4x32xf32>
      %c0_114 = arith.constant 0 : index
      %c0_115 = arith.constant 0 : index
      %69 = vector.load %arg4[%c0_114, %c0_115] : memref<1x32xf32, #tpu.memory_space<vmem>>, vector<1x32xf32>
      %70 = vector.broadcast %69 : vector<1x32xf32> to vector<4x32xf32>
      %71 = arith.addf %68, %70 : vector<4x32xf32>
      %c0_116 = arith.constant 0 : index
      %c0_117 = arith.constant 0 : index
      %72 = arith.index_cast %arg7 : i32 to index
      %c0_118 = arith.constant 0 : index
      %c0_119 = arith.constant 0 : index
      %73 = vector.load %arg5[%c0_116, %c0_117, %72, %c0_118, %c0_119] : memref<1x1x4x4x32xf32, #tpu.memory_space<vmem>>, vector<1x1x1x4x32xf32>
      %74 = vector.shape_cast %73 : vector<1x1x1x4x32xf32> to vector<4x32xf32>
      %75 = vector.shape_cast %71 : vector<4x32xf32> to vector<1x1x1x4x32xf32>
      tpu.vector_store %arg5[%c0_116, %c0_117, %72, %c0_118, %c0_119], %75 {strides = array<i32>} : memref<1x1x4x4x32xf32, #tpu.memory_space<vmem>>, vector<1x1x1x4x32xf32>,
    }
    %c4_i32_0 = arith.constant 4 : i32
    return
  }
  func.func @transform_0(%arg0: i32, %arg1: i32) -> (i32, i32, i32, i32, i32, i32, i32) {
    %c0_i32 = arith.constant 0 : i32
    %c0_i32_0 = arith.constant 0 : i32
    %c0_i32_1 = arith.constant 0 : i32
    %c0_i32_2 = arith.constant 0 : i32
    %c0_i32_3 = arith.constant 0 : i32
    %c0_i32_4 = arith.constant 0 : i32
    return %arg0, %c0_i32, %arg1, %c0_i32_0, %c0_i32_1, %c0_i32_2, %c0_i32_3 : i32, i32, i32, i32, i32, i32, i32
  }
  func.func @transform_1(%arg0: i32, %arg1: i32) -> (i32, i32) {
    %c0_i32 = arith.constant 0 : i32
    %c0_i32_0 = arith.constant 0 : i32
    %c0_i32_1 = arith.constant 0 : i32
    return %c0_i32, %c0_i32_0 : i32, i32
  }
  func.func @transform_2(%arg0: i32, %arg1: i32) -> (i32, i32) {
    %c0_i32 = arith.constant 0 : i32
    %c0_i32_0 = arith.constant 0 : i32
    %c0_i32_1 = arith.constant 0 : i32
    return %c0_i32, %c0_i32_0 : i32, i32
  }
  func.func @transform_3(%arg0: i32, %arg1: i32) -> (i32, i32, i32, i32, i32) {
    %c0_i32 = arith.constant 0 : i32
    %c0_i32_0 = arith.constant 0 : i32
    %c0_i32_1 = arith.constant 0 : i32
    %c0_i32_2 = arith.constant 0 : i32
    return %arg0, %arg1, %c0_i32, %c0_i32_0, %c0_i32_1 : i32, i32, i32, i32, i32
  }
}

</mosaic_0001>

<bundles_post_ra>
// kernel: patch_embedding_3d.1
= control target key start
LH: loop header
LB: loop body
LE: loop exit
PB: predicated region body
PF: predicated region fallthrough
CT: control target
= control target key end

     0   :  { %8 = vsyncpa [#allocation5], 0  ;;  %s1459_s0 = inlined_call_operand.vmem [shape: f32[2,4,2,4,4,4,4], index: 0, kind: input, shape index: {}]   ;;  %s1460_s1 = inlined_call_operand.vmem [shape: bf16[64,32], index: 1, kind: input, shape index: {}]   ;;  %s1461_s2 = inlined_call_operand.vmem [shape: f32[1,32], index: 2, kind: input, shape index: {}]   ;;  %s1462_s3 = inlined_call_operand.hbm [shape: f32[2,2,4,4,32], index: 3, kind: output, shape index: {}]  }
   0x1   :  { %10 = vsyncpa [#allocation5 + $0x1], 0  ;;  %s1190_s12 = smov 0   ;;  %s1192_s13 = smov 0  }
   0x2   :  { %s1194_s14 = smov 0   ;;  %s1196_s15 = smov 0  }
   0x3   :  { %s1198_s16 = smov 0   ;;  %s1200_s17 = smov 0  }
   0x4   :  { %s1202_s18 = smov 0   ;;  %s1204_s19 = smov 0  }
   0x5 LB: > { %s872_s20 = sadd.s32 4294967295, %s1144_s19   ;;  %s873_s21 = sadd.s32 4294967294, %s1144_s19   ;;  %s1144_s19 = sphi %s1204_s19, %s16_s19   ;;  %s1140_s18 = sphi %s1202_s18, %s1472_s18   ;;  %s1136_s17 = sphi %s1200_s17, %s1471_s17   ;;  %s1132_s16 = sphi %s1198_s16, %s1470_s16   ;;  %s1128_s15 = sphi %s1196_s15, %s1469_s15   ;;  %s1124_s14 = sphi %s1194_s14, %s1468_s14   ;;  %s1120_s13 = sphi %s1192_s13, %s1467_s13   ;;  %s1116_s12 = sphi %s1190_s12, %s1466_s12  }
   0x6   : > { %s25_s22 = sadd.s32 1, %s1136_s17  ;;  %s28_s23 = sadd.s32 1, %s1140_s18 }
   0x7   : > { %p26_p0 = scmp.ge.s32.totalorder %s25_s22, 2  ;;  %p44_p1 = scmp.ne.s32.totalorder %s1124_s14, %s1120_s13 }
   0x8   : > { %p45_p2 = scmp.eq.s32.totalorder %s1144_s19, 0  ;;  %p118_p5 = scmp.eq.s32.totalorder %s872_s20, 3 }
   0x9   : > { %s1474_s22 = smov (%p26_p0, %s25_s22), 0  ;;  %s1476_s23 = smov (!%p26_p0, %s28_s23), %s1140_s18 }
   0xa   : > { %s33_s24 = ssub.s32 %s1136_s17, %s1474_s22  ;;  %p1242_p3 = por %p45_p2, %p44_p1 }
   0xb   : > { %p30_p4 = scmp.ge.s32.totalorder %s1476_s23, 2  ;;  %p123_p6 = scmp.ne.s32.totalorder %s1120_s13, %s1116_s12 }
   0xc   : > { %p124_p7 = scmp.eq.s32.totalorder %s873_s21, 3  ;;  %p1250_p8 = por %p118_p5, %p44_p1 }
   0xd   : > { %s1478_s23 = smov (%p30_p4, %s1476_s23), 0  ;;  %s37_s30 = sadd.s32 1, %s1124_s14 }
   0xe   : > { %p1254_p9 = por %p124_p7, %p123_p6  ;;  %s32_s28 = ssub.s32 %s1140_s18, %s1478_s23 }
   0xf   : > { %s34_s29 = sor.u32 %s33_s24, %s32_s28  ;;  %p875_p11 = scmp.ge.s32.totalorder %s1144_s19, 4 }
  0x10   : > { %p35_p10 = scmp.eq.s32.totalorder %s34_s29, 0 }
  0x11   : > { %146 = sbr.rel (%p875_p11) target bundleno = 47 (0x2f), region = 24 }
  0x12   : > { %s1262_s4 = scalar_select %p35_p10, %s1124_s14, %s37_s30  }
  0x18   : > { %149 = sbr.rel (!%p1242_p3) target bundleno = 47 (0x2f), region = 28  ;;  %s151_s5 = sand.u32 (%p1242_p3), 1, %s1124_s14  }
  0x19   : > { %s877_s6 = sshll.u32 (%p1242_p3), %s1136_s17, 4  ;;  %s876_s7 = sshll.u32 (%p1242_p3), %s151_s5, 8 }
  0x1a   : > { %s878_s8 = sshll.u32 (%p1242_p3), %s1140_s18, 7  ;;  %s1278_s24 = scalar_lea.vmem (%p1242_p3), [#allocation3], %s876_s7 }
  0x1b   : > { %s156_s9 = sadd.s32 (%p1242_p3), %s878_s8, %s877_s6 }
  0x1c   : > { %s879_s10 = sshll.u32 (%p1242_p3), %s156_s9, 2 }
  0x1d   : > { %s1273_s21 = scalar_lea.vmem (%p1242_p3), %s1459_s0, %s879_s10 }
  0x1e   : > { %v174_v0 = vld [vmem:[%s1273_s21] sm:$0xff] (%p1242_p3)   ;;  %v178_v1 = vld [vmem:[%s1273_s21 + $0x8] sm:$0xff] (%p1242_p3)   ;;  %v182_v2 = vld [vmem:[%s1273_s21 + $0x10] sm:$0xff] (%p1242_p3)  }
  0x1f   : > { %175 = vst [vmem:[%s1278_s24] sm:$0xff] %v174_v0   ;;  %179 = vst [vmem:[%s1278_s24 + $0x8] sm:$0xff] %v178_v1   ;;  %v186_v3 = vld [vmem:[%s1273_s21 + $0x18] sm:$0xff]   ;;  %v190_v4 = vld [vmem:[%s1273_s21 + $0x20] sm:$0xff]  }
  0x20   : > { %183 = vst [vmem:[%s1278_s24 + $0x10] sm:$0xff] %v182_v2   ;;  %v194_v5 = vld [vmem:[%s1273_s21 + $0x28] sm:$0xff]   ;;  %187 = vst [vmem:[%s1278_s24 + $0x18] sm:$0xff] %v186_v3   ;;  %v198_v6 = vld [vmem:[%s1273_s21 + $0x30] sm:$0xff]  }
  0x21   : > { %191 = vst [vmem:[%s1278_s24 + $0x20] sm:$0xff] %v190_v4   ;;  %195 = vst [vmem:[%s1278_s24 + $0x28] sm:$0xff] %v194_v5   ;;  %v202_v7 = vld [vmem:[%s1273_s21 + $0x38] sm:$0xff]   ;;  %v206_v8 = vld [vmem:[%s1273_s21 + $0x80] sm:$0xff]  }
  0x22   : > { %199 = vst [vmem:[%s1278_s24 + $0x30] sm:$0xff] %v198_v6   ;;  %203 = vst [vmem:[%s1278_s24 + $0x38] sm:$0xff] %v202_v7   ;;  %v210_v9 = vld [vmem:[%s1273_s21 + $0x88] sm:$0xff]   ;;  %v214_v10 = vld [vmem:[%s1273_s21 + $0x90] sm:$0xff]  }
  0x23   : > { %207 = vst [vmem:[%s1278_s24 + $0x40] sm:$0xff] %v206_v8   ;;  %v218_v11 = vld [vmem:[%s1273_s21 + $0x98] sm:$0xff]   ;;  %211 = vst [vmem:[%s1278_s24 + $0x48] sm:$0xff] %v210_v9   ;;  %v222_v12 = vld [vmem:[%s1273_s21 + $0xa0] sm:$0xff]  }
  0x24   : > { %215 = vst [vmem:[%s1278_s24 + $0x50] sm:$0xff] %v214_v10   ;;  %219 = vst [vmem:[%s1278_s24 + $0x58] sm:$0xff] %v218_v11   ;;  %v226_v13 = vld [vmem:[%s1273_s21 + $0xa8] sm:$0xff]   ;;  %v230_v14 = vld [vmem:[%s1273_s21 + $0xb0] sm:$0xff]  }
  0x25   : > { %223 = vst [vmem:[%s1278_s24 + $0x60] sm:$0xff] %v222_v12   ;;  %227 = vst [vmem:[%s1278_s24 + $0x68] sm:$0xff] %v226_v13   ;;  %v234_v15 = vld [vmem:[%s1273_s21 + $0xb8] sm:$0xff]   ;;  %v238_v16 = vld [vmem:[%s1273_s21 + $0x100] sm:$0xff]  }
  0x26   : > { %231 = vst [vmem:[%s1278_s24 + $0x70] sm:$0xff] %v230_v14   ;;  %v242_v17 = vld [vmem:[%s1273_s21 + $0x108] sm:$0xff]   ;;  %235 = vst [vmem:[%s1278_s24 + $0x78] sm:$0xff] %v234_v15   ;;  %v246_v18 = vld [vmem:[%s1273_s21 + $0x110] sm:$0xff]  }
  0x27   : > { %239 = vst [vmem:[%s1278_s24 + $0x80] sm:$0xff] %v238_v16   ;;  %243 = vst [vmem:[%s1278_s24 + $0x88] sm:$0xff] %v242_v17   ;;  %v250_v19 = vld [vmem:[%s1273_s21 + $0x118] sm:$0xff]   ;;  %v254_v20 = vld [vmem:[%s1273_s21 + $0x120] sm:$0xff]  }
  0x28   : > { %247 = vst [vmem:[%s1278_s24 + $0x90] sm:$0xff] %v246_v18   ;;  %251 = vst [vmem:[%s1278_s24 + $0x98] sm:$0xff] %v250_v19   ;;  %v258_v21 = vld [vmem:[%s1273_s21 + $0x128] sm:$0xff]   ;;  %v262_v22 = vld [vmem:[%s1273_s21 + $0x130] sm:$0xff]  }
  0x29   : > { %255 = vst [vmem:[%s1278_s24 + $0xa0] sm:$0xff] %v254_v20   ;;  %v266_v23 = vld [vmem:[%s1273_s21 + $0x138] sm:$0xff]   ;;  %259 = vst [vmem:[%s1278_s24 + $0xa8] sm:$0xff] %v258_v21   ;;  %v270_v24 = vld [vmem:[%s1273_s21 + $0x180] sm:$0xff]  }
  0x2a   : > { %263 = vst [vmem:[%s1278_s24 + $0xb0] sm:$0xff] %v262_v22   ;;  %267 = vst [vmem:[%s1278_s24 + $0xb8] sm:$0xff] %v266_v23   ;;  %v274_v25 = vld [vmem:[%s1273_s21 + $0x188] sm:$0xff]   ;;  %v278_v26 = vld [vmem:[%s1273_s21 + $0x190] sm:$0xff]  }
  0x2b   : > { %271 = vst [vmem:[%s1278_s24 + $0xc0] sm:$0xff] %v270_v24   ;;  %275 = vst [vmem:[%s1278_s24 + $0xc8] sm:$0xff] %v274_v25   ;;  %v282_v27 = vld [vmem:[%s1273_s21 + $0x198] sm:$0xff]   ;;  %v286_v28 = vld [vmem:[%s1273_s21 + $0x1a0] sm:$0xff]  }
  0x2c   : > { %279 = vst [vmem:[%s1278_s24 + $0xd0] sm:$0xff] %v278_v26   ;;  %v290_v29 = vld [vmem:[%s1273_s21 + $0x1a8] sm:$0xff]   ;;  %283 = vst [vmem:[%s1278_s24 + $0xd8] sm:$0xff] %v282_v27   ;;  %v294_v30 = vld [vmem:[%s1273_s21 + $0x1b0] sm:$0xff]  }
  0x2d   : > { %287 = vst [vmem:[%s1278_s24 + $0xe0] sm:$0xff] %v286_v28   ;;  %291 = vst [vmem:[%s1278_s24 + $0xe8] sm:$0xff] %v290_v29   ;;  %v298_v31 = vld [vmem:[%s1273_s21 + $0x1b8] sm:$0xff]  }
  0x2e   : > { %295 = vst [vmem:[%s1278_s24 + $0xf0] sm:$0xff] %v294_v30   ;;  %299 = vst [vmem:[%s1278_s24 + $0xf8] sm:$0xff] %v298_v31  }
  0x2f PF: > { %p880_p12 = scmp.ge.s32.totalorder %s1144_s19, 1  ;;  %p451_p13 = scmp.lt.s32.totalorder %s1144_s19, 5 }
  0x31   : > { %p452_p0 = pnand %p880_p12, %p451_p13 }
  0x32   : > { %s1344_s25 = sand.u32 (!%p452_p0), 1, %s1120_s13   ;;  %s1352_s6 = smov (!%p452_p0), 0  }
  0x33   : > { %455 = sbr.rel (%p452_p0) target bundleno = 443 (0x1bb), region = 69  ;;  %s881_s28 = sshll.u32 (!%p452_p0), %s1344_s25, 8 }
  0x34   : > { %s882_s29 = sshll.u32 (!%p452_p0), %s1344_s25, 4  ;;  %s1348_s30 = scalar_lea.vmem (!%p452_p0), [#allocation3], %s881_s28 }
  0x35   : > { %s1350_s5 = scalar_lea.vmem (!%p452_p0), [#allocation4], %s882_s29 }
  0x3a LB: >> { %s883_s7 = sshll.u32 %s1148_s6, 4  ;;  %s1150_s9 = smov 4   ;;  %vm491_vm0 = vcmask 27648   ;;  %v1042_v40 = vld [vmem:[%s1460_s1] sm:$0xff]   ;;  %v1156_v42 = vmov 0.0   ;;  %v1043_v43 = vld [vmem:[%s1460_s1 + $0x8] sm:$0xff]   ;;  %s1148_s6 = sphi %s1352_s6, %s487_s6  }
  0x3b   : >> { %s1359_s8 = scalar_lea.vmem %s1348_s30, %s883_s7 [#allocation3]  ;;  %s1151_s10 = smov 12   ;;  %932 = vmatprep.subr.bf16.mxu0 %v1156_v42  ;;  %v1044_v46 = vld [vmem:[%s1460_s1 + $0x10] sm:$0xff]   ;;  %vm1161_vm1 = vmmov 0   ;;  %v1045_v49 = vld [vmem:[%s1460_s1 + $0x18] sm:$0xff]   ;;  %vm500_vm2 = vcmask 60448   ;;  %vm509_vm3 = vcmask 93248  }
  0x3c   : >> { %v885_v32 = vld [vmem:[%s1359_s8 + $0x4] sm:$0xf]  ;;  %v889_v33 = vld [vmem:[%s1359_s8 + $0xc] sm:$0xf]  ;;  %v887_v34 = vld [vmem:[%s1359_s8 + $0x8] sm:$0xf]  ;;  %933 = vmatpush3.bf16.msra.mxu0 %v1042_v40  ;;  %940 = vmatprep.mubr.msk.bf16.mxu0 %vm1161_vm1, %v1156_v42 }
  0x3d   : >> { %497 = vrot.lane.b32.xlu0 %v885_v32, %s1150_s9  ;;  %515 = vrot.lane.b32.xlu1 %v889_v33, %s1151_s10  ;;  %v891_v35 = vld [vmem:[%s1359_s8 + $0x40] sm:$0xf]  ;;  %s1152_s11 = smov 8   ;;  %s1153_s20 = smov 16   ;;  %v893_v36 = vld [vmem:[%s1359_s8 + $0x44] sm:$0xf] }
  0x3e   : >> { %v895_v37 = vld [vmem:[%s1359_s8 + $0x48] sm:$0xf]  ;;  %v490_v38 = vld [vmem:[%s1359_s8] sm:$0xf]  ;;  %v897_v39 = vld [vmem:[%s1359_s8 + $0x4c] sm:$0xf]  ;;  %934 = vmatprep.subr.bf16.mxu0 %v1156_v42 }
  0x3f   : >> { %492 = vst.msk [vmem:[#allocation2] sm:$0xf] %vm491_vm0, %v490_v38  ;;  %s1154_s21 = smov 20   ;;  %s1155_s24 = smov 24   ;;  %v899_v41 = vld [vmem:[%s1359_s8 + $0x80] sm:$0xf] }
  0x40   : >> { %s1157_s7 = smov 28   ;;  %s1158_s9 = smov 32   ;;  %v901_v44 = vld [vmem:[%s1359_s8 + $0x84] sm:$0xf]  ;;  %v903_v45 = vld [vmem:[%s1359_s8 + $0x88] sm:$0xf]  ;;  %935 = vmatpush3.bf16.msra.mxu0 %v1043_v43 }
  0x41   : >> { %506 = vrot.lane.b32.xlu0 %v887_v34, %s1152_s11  ;;  %524 = vrot.lane.b32.xlu1 %v891_v35, %s1153_s20  ;;  %s1160_s28 = smov 40   ;;  %v905_v47 = vld [vmem:[%s1359_s8 + $0x8c] sm:$0xf]  ;;  %v907_v48 = vld [vmem:[%s1359_s8 + $0xc0] sm:$0xf]  ;;  %s1163_s10 = smov 48  }
  0x42   : >> { %936 = vmatprep.subr.bf16.mxu0 %v1156_v42  ;;  %v909_v50 = vld [vmem:[%s1359_s8 + $0xc4] sm:$0xf]  ;;  %v911_v51 = vld [vmem:[%s1359_s8 + $0xc8] sm:$0xf]  ;;  %s1164_s11 = smov 52   ;;  %s1165_s20 = smov 56  }
  0x43   : >> { %v913_v52 = vld [vmem:[%s1359_s8 + $0xcc] sm:$0xf]  ;;  %vm518_vm4 = vcmask 126048   ;;  %vm527_vm5 = vcmask 158848   ;;  %vm536_vm6 = vcmask 191648   ;;  %vm545_vm7 = vcmask 224448  }
  0x44   : >> { %937 = vmatpush3.bf16.msra.mxu0 %v1044_v46  ;;  %vm554_vm8 = vcmask 257248   ;;  %vm563_vm9 = vcmask 290048   ;;  %vm572_vm10 = vcmask 322848   ;;  %vm581_vm11 = vcmask 355648   ;;  %s920_s8 = sshll.u32 %s1148_s6, 2  ;;  %s487_s6 = sadd.s32 1, %s1148_s6  }
  0x45   : >> { %533 = vrot.lane.b32.xlu0 %v893_v36, %s1154_s21  ;;  %542 = vrot.lane.b32.xlu1 %v895_v37, %s1155_s24  ;;  %s1159_s24 = smov 36   ;;  %s1166_s21 = smov 60   ;;  %vm590_vm12 = vcmask 388448   ;;  %vm599_vm13 = vcmask 421248   ;;  %vm608_vm14 = vcmask 454048   ;;  %vm617_vm15 = vcmask 486848  }
  0x46   : >> { %938 = vmatprep.subr.bf16.mxu0 %v1156_v42  ;;  %vm626_vm0 = vcmask 519648   ;;  %vm669_vm1 = vcmask 523264   ;;  %v914_v6 = vld [vmem:[%s1461_s2] ss:$0 sm:$0xff]  ;;  %s714_s29 = scalar_lea.vmem %s1350_s5, %s920_s8 [#allocation4]  ;;  %p484_p1 = scmp.ge.s32.totalorder %s487_s6, 4  }
  0x47   : > { %s718_s30 = scalar_lea.sflag (%p484_p1), [#allocation5], %s1344_s25 }
  0x48   : >> { %939 = vmatpush3.bf16.msra.mxu0 %v1045_v49 }
  0x49   : >> { %551 = vrot.lane.b32.xlu0 %v897_v39, %s1157_s7  ;;  %560 = vrot.lane.b32.xlu1 %v899_v41, %s1158_s9  ;;  %s1162_s9 = smov 44   ;;  %s922_s7 = sshll.u32 (%p484_p1), %s1128_s15, 2 }
  0x4a   : > { %s1167_s15 = smov (%p484_p1), [#allocation4]  }
  0x4d   : >> { %569 = vrot.lane.b32.xlu0 %v901_v44, %s1159_s24  ;;  %578 = vrot.lane.b32.xlu1 %v903_v45, %s1160_s28 }
  0x51   : >> { %587 = vrot.lane.b32.xlu0 %v905_v47, %s1162_s9  ;;  %596 = vrot.lane.b32.xlu1 %v907_v48, %s1163_s10  ;;  %s923_s9 = sshll.u32 (%p484_p1), %s1132_s16, 3  ;;  %s733_s10 = sshll.u32 (%p484_p1), %s1350_s5, 4  ;;  %s1400_s10 = int_to_ptr.vmem [resolvable:$true] %s733_s10 }
  0x52   : > { %s1046_s24 = scalar_lea.vmem (%p484_p1), %s1400_s10, 256  ;;  %s1050_s16 = sshll.u32 (%p484_p1), %s1167_s15, 4  ;;  %s1051_s16 = int_to_ptr.vmem [resolvable:$false] %s1050_s16 }
  0x53   : > { %p1047_p2 = scmp.ne.s32.totalorder (%p484_p1), %s1400_s10, %s1046_s24  ;;  %s1052_s5 = scalar_lea.vmem (%p484_p1), %s1051_s16, 512 }
  0x54   : > { %p1053_p5 = scmp.lt.s32.totalorder (%p484_p1), %s1400_s10, %s1051_s16  ;;  %p1054_p6 = scmp.lt.s32.totalorder (%p484_p1), %s1052_s5, %s1046_s24 }
  0x55   : >> { %605 = vrot.lane.b32.xlu0 %v909_v50, %s1164_s11  ;;  %614 = vrot.lane.b32.xlu1 %v911_v51, %s1165_s20  ;;  %s730_s11 = sadd.s32 (%p484_p1), %s923_s9, %s922_s7  ;;  %p1048_p3 = pnand (%p484_p1), %p1047_p2, %p1250_p8 }
  0x56   : > { %s924_s20 = sshll.u32 (%p484_p1), %s730_s11, 6  ;;  %p1055_p7 = por (%p484_p1), %p1054_p6, %p1053_p5 }
  0x57   : > { %s1405_s6 = scalar_lea.hbm (%p484_p1), %s1462_s3, %s924_s20  ;;  %p1049_p4 = pneg (%p484_p1), %p1048_p3 }
  0x59   : >> { %623 = vrot.lane.b32.xlu0 %v913_v52, %s1166_s21  ;;  %p1056_p10 = pnand (%p484_p1), %p1055_p7, %p1049_p4 }
  0xaf   : >> { %v498_v53 = vpop.permute.xlu0 %497  ;;  %v516_v54 = vpop.permute.xlu1 %515 }
  0xb0   : >> { %501 = vst.msk [vmem:[#allocation2] sm:$0xf] %vm500_vm2, %v498_v53  ;;  %vm715_vm2 = vcmask 257024  }
  0xb3   : >> { %v507_v55 = vpop.permute.xlu0 %506  ;;  %v525_v56 = vpop.permute.xlu1 %524 }
  0xb4   : >> { %510 = vst.msk [vmem:[#allocation2] sm:$0xf] %vm509_vm3, %v507_v55 }
  0xb5   : >> { %519 = vst.msk [vmem:[#allocation2] sm:$0xf] %vm518_vm4, %v516_v54 }
  0xb6   : >> { %528 = vst.msk [vmem:[#allocation2] sm:$0xf] %vm527_vm5, %v525_v56 }
  0xb7   : >> { %v534_v57 = vpop.permute.xlu0 %533  ;;  %v543_v58 = vpop.permute.xlu1 %542 }
  0xb8   : >> { %537 = vst.msk [vmem:[#allocation2] sm:$0xf] %vm536_vm6, %v534_v57 }
  0xb9   : >> { %546 = vst.msk [vmem:[#allocation2] sm:$0xf] %vm545_vm7, %v543_v58 }
  0xbb   : >> { %v552_v59 = vpop.permute.xlu0 %551  ;;  %v561_v60 = vpop.permute.xlu1 %560 }
  0xbc   : >> { %555 = vst.msk [vmem:[#allocation2] sm:$0xf] %vm554_vm8, %v552_v59 }
  0xbd   : >> { %564 = vst.msk [vmem:[#allocation2] sm:$0xf] %vm563_vm9, %v561_v60 }
  0xbf   : >> { %v570_v61 = vpop.permute.xlu0 %569  ;;  %v579_v62 = vpop.permute.xlu1 %578 }
  0xc0   : >> { %573 = vst.msk [vmem:[#allocation2] sm:$0xf] %vm572_vm10, %v570_v61 }
  0xc1   : >> { %582 = vst.msk [vmem:[#allocation2] sm:$0xf] %vm581_vm11, %v579_v62 }
  0xc3   : >> { %v588_v63 = vpop.permute.xlu0 %587  ;;  %v597_v0 = vpop.permute.xlu1 %596 }
  0xc4   : >> { %591 = vst.msk [vmem:[#allocation2] sm:$0xf] %vm590_vm12, %v588_v63 }
  0xc5   : >> { %600 = vst.msk [vmem:[#allocation2] sm:$0xf] %vm599_vm13, %v597_v0 }
  0xc7   : >> { %v606_v1 = vpop.permute.xlu0 %605  ;;  %v615_v2 = vpop.permute.xlu1 %614 }
  0xc8   : >> { %609 = vst.msk [vmem:[#allocation2] sm:$0xf] %vm608_vm14, %v606_v1 }
  0xc9   : >> { %618 = vst.msk [vmem:[#allocation2] sm:$0xf] %vm617_vm15, %v615_v2 }
  0xcb   : >> { %v624_v3 = vpop.permute.xlu0 %623 }
  0xcc   : >> { %627 = vst.msk [vmem:[#allocation2] sm:$0xf] %vm626_vm0, %v624_v3 }
  0xd3   : >> { %v628_v4 = vld [vmem:[#allocation2] sm:$0xf] }
  0xd4   : >> { %v629_v5 = vpack.c.bf16 %v628_v4, %v628_v4 }
  0xd6   : >> { %941 = vmatmul.mubr.msk.bf16.vlgmr.msra.gmra.mrb[0].mxu0 %vm669_vm1, %v629_v5 }
 0x1a6   : > { %486 = sbr.rel (!%p484_p1) target bundleno = 58 (0x3a), region = 137 }
 0x1a9   : >> { %v707_v7 = vpop.f32.mrb[0].mxu0 }
 0x1aa   : >> { %v708_v8 = vadd.f32 %v914_v6, %v707_v7  ;;  %v942_v9 = vpop.f32.mrb[1].mxu0 }
 0x1ab   : >> { %v710_v10 = vpop.f32.mrb[2].mxu0 }
 0x1ac   : >> { %716 = vst.msk [vmem:[%s714_s29] sm:$0xf] %vm715_vm2, %v708_v8  ;;  %v943_v11 = vpop.f32.mrb[3].mxu0 }
 0x1ad   : > { %1059 = shalt.err (!%p1056_p10)
}
 0x1ae   : > { %s1060_s28 = scalar_lea.hbm %s1405_s6, 256  ;;  %s1064_s9 = scalar_lea.hbm %s1462_s3, 1024 }
 0x1af   : > { %p1061_p11 = scmp.ne.s32.totalorder %s1405_s6, %s1060_s28  ;;  %p1065_p0 = scmp.lt.u32.totalorder %s1405_s6, %s1462_s3 }
 0x1b0   : > { %p1066_p1 = scmp.lt.u32.totalorder %s1064_s9, %s1060_s28  ;;  %p1068_p3 = scmp.lt.u32.totalorder %s1060_s28, %s1405_s6 }
 0x1b1   : > { %p1062_p12 = pnand %p1061_p11, %p1250_p8 }
 0x1b2   : > { %p1067_p2 = por %p1066_p1, %p1065_p0 }
 0x1b3   : > { %p1063_p13 = pneg %p1062_p12 }
 0x1b4   : > { %p1069_p4 = por %p1068_p3, %p1067_p2 }
 0x1b6   : > { %p1070_p5 = pnand %p1069_p4, %p1063_p13 }
 0x1b8   : > { %1073 = shalt.err (!%p1070_p5)
}
 0x1b9   : > { %s1168_s21 = smov 64   ;;  %s1169_s8 = smov 4  }
 0x1ba   : > { %944 = dma.vmem_to_hbm [thread:$0]  (%p1250_p8), %s1400_s10, 256, %s1405_s6, %s718_s30, %s1168_s21, %s1168_s21, %s1169_s8  }
 0x1bb PF: > { %p950_p6 = scmp.ge.s32.totalorder %s1144_s19, 2  ;;  %s748_s24 = sand.u32 1, %s1116_s12  }
 0x1bc   : > { %s749_s15 = scalar_lea.sflag [#allocation5], %s748_s24 }
 0x1bd   : > { %p947_p7 = pnand %p950_p6, %p1254_p9 }
 0x1bf   : > { %1111 = dma.done.wait (!%p947_p7), %s749_s15, 256  }
 0x1c0   : > { %1113 = vsyncadd (!%p947_p7), %s749_s15, 4294967040  ;;  %s16_s19 = sadd.s32 1, %s1144_s19   ;;  %s1466_s12 = smov %s1120_s13 }
 0x1c1   : > { %p13_p10 = scmp.ge.s32.totalorder %s16_s19, 6   ;;  %s1467_s13 = smov %s1124_s14 }
 0x1c2   : > { %s1468_s14 = smov %s1262_s4  ;;  %s1469_s15 = smov %s1136_s17 }
 0x1c3   : > { %s1470_s16 = smov %s1140_s18  ;;  %s1471_s17 = smov %s1474_s22 }
 0x1c4   : > { %s1472_s18 = smov %s1478_s23  ;;  %15 = sbr.rel (!%p13_p10) target bundleno = 5 (0x5), region = 148 }
 0x1cb   :  { %754 = vsyncpa [#allocation5], 1 }
 0x1cc   :  { %756 = vsyncpa [#allocation5 + $0x1], 1 }

</bundles_post_ra>
